<compile_context>
chip_gen: v6e
topology: v6e:2x2x1
jax: 0.10.0
libtpu: 0.0.40
codegen_flags: <defaults>
</compile_context>

<pallas_src>
import jax
import jax.numpy as jnp
from jax.experimental import pallas as pl
from jax.experimental.pallas import tpu as pltpu


def _miou_kernel(x_ref, t_ref, inter_ref, union_ref):
    # x_ref:     (1, C, tr, 128)  logits tile (native dtype)
    # t_ref:     (1, 1, tr, 128)  int32 labels (-1 at padded pixels)
    # inter_ref: (1, 1, C, 128)   f32 per-lane partial intersection (resident)
    # union_ref: (1, 1, C, 128)   f32 per-lane partial union (resident)
    @pl.when(pl.program_id(2) == 0)
    def _():
        inter_ref[...] = jnp.zeros_like(inter_ref)
        union_ref[...] = jnp.zeros_like(union_ref)

    x = x_ref[0].astype(jnp.float32)                 # (C, tr, 128)
    t = t_ref[0]                                     # (1, tr, 128)

    # softmax over the channel (leading plane) axis — elementwise over C
    # dense spatial planes; single exact reciprocal per pixel, fused with the
    # padded-pixel mask so masked pixels contribute 0 probability everywhere.
    m = jnp.max(x, axis=0, keepdims=True)            # (1, tr, 128)
    e = jnp.exp(x - m)                               # (C, tr, 128)  EUP
    valid = (t >= 0).astype(jnp.float32)             # (1, tr, 128)
    inv = valid / jnp.sum(e, axis=0, keepdims=True)  # (1, tr, 128)
    p = e * inv                                      # (C, tr, 128)

    # one-hot target (scatter_(1, target, 1)); t == -1 at padding never matches
    c_iota = jax.lax.broadcasted_iota(jnp.int32, x.shape, 0)
    onehot = (c_iota == t).astype(jnp.float32)       # (C, tr, 128)

    pt = p * onehot
    inter_rows = jnp.sum(pt, axis=1)                 # (C, 128) sublane reduce
    union_rows = jnp.sum(p, axis=1) + jnp.sum(onehot, axis=1) - inter_rows

    inter_ref[0, 0] += inter_rows
    union_ref[0, 0] += union_rows


def miou_loss(logits, target, weight, epsilon=1e-8):
    """logits: (N, C, H, W) float; target: (N, H, W) int; weight: (C,) float."""
    N, C, H, W = logits.shape
    HW = H * W
    LANE, SUB = 128, 8
    P = 2                      # spatial split -> 2 TensorCores on v7x

    rows = pl.cdiv(HW, LANE)

    # VMEM-bounded row cap for one logits tile (~<= 4 MiB), multiple of 8.
    bytes_per_row = C * LANE * logits.dtype.itemsize
    cap_rows = max(SUB, (4 * 1024 * 1024 // bytes_per_row) // SUB * SUB)
    cap_rows = min(cap_rows, 1024)

    # Pick the largest tile <= cap that could cover half the image, fix the
    # reduction tile count K from it, then shrink tr so the P*K tiles cover
    # `rows` with minimal padding (< P*K*8 rows).  Avoids the v2 pathology of
    # padding the spatial axis by up to 2x.
    tr0 = min(cap_rows, pl.cdiv(pl.cdiv(rows, P), SUB) * SUB)
    K = pl.cdiv(rows, P * tr0)
    tr = pl.cdiv(pl.cdiv(rows, P * K), SUB) * SUB

    chunk = P * tr
    rows_pad = K * chunk
    hw_pad = rows_pad * LANE

    # native dtype for logits (no f32 up-cast pass over HBM)
    x = logits.reshape(N, C, HW)
    t = target.reshape(N, 1, HW).astype(jnp.int32)
    if hw_pad != HW:
        x = jnp.pad(x, ((0, 0), (0, 0), (0, hw_pad - HW)))
        t = jnp.pad(t, ((0, 0), (0, 0), (0, hw_pad - HW)), constant_values=-1)
    x = x.reshape(N, C, rows_pad, LANE)
    t = t.reshape(N, 1, rows_pad, LANE)

    inter_p, union_p = pl.pallas_call(
        _miou_kernel,
        out_shape=(jax.ShapeDtypeStruct((N, P, C, LANE), jnp.float32),
                   jax.ShapeDtypeStruct((N, P, C, LANE), jnp.float32)),
        grid_spec=pltpu.PrefetchScalarGridSpec(
            num_scalar_prefetch=0,
            grid=(N, P, K),
            in_specs=[
                pl.BlockSpec((1, C, tr, LANE),
                             lambda n, p, k: (n, 0, p * K + k, 0)),
                pl.BlockSpec((1, 1, tr, LANE),
                             lambda n, p, k: (n, 0, p * K + k, 0)),
            ],
            out_specs=[
                pl.BlockSpec((1, 1, C, LANE), lambda n, p, k: (n, p, 0, 0)),
                pl.BlockSpec((1, 1, C, LANE), lambda n, p, k: (n, p, 0, 0)),
            ]),
        compiler_params=pltpu.CompilerParams(
            dimension_semantics=("parallel", "parallel", "arbitrary"),
            vmem_limit_bytes=32 * 1024 * 1024),
    )(x, t)

    # tiny final reductions in plain JAX: sum over spatial halves + lanes
    inter = inter_p.sum(axis=(1, 3))                 # (N, C)
    union = union_p.sum(axis=(1, 3))                 # (N, C)

    # matches nn.Module __init__: self.weights = weight * weight
    weights = (weight * weight).astype(jnp.float32)
    loss = weights * inter / (weights * union + epsilon)
    return -jnp.mean(loss)


def _reference_miou_loss(logits, target, weight, epsilon=1e-8):
    N, C, H, W = logits.shape
    p = jax.nn.softmax(logits.astype(jnp.float32), axis=1)
    onehot = jax.nn.one_hot(target, C, axis=1, dtype=jnp.float32)
    inter = (p * onehot).reshape(N, C, -1).sum(-1)
    union = (p + onehot - p * onehot).reshape(N, C, -1).sum(-1)
    w = weight * weight
    loss = w * inter / (w * union + epsilon)
    return -jnp.mean(loss)


if __name__ == "__main__":
    key = jax.random.PRNGKey(0)
    k_logits, k_target = jax.random.split(key)

    N, C, H, W = 2, 4, 16, 16
    logits = jax.random.normal(k_logits, (N, C, H, W), dtype=jnp.float32)
    target = jax.random.randint(k_target, (N, H, W), 0, C, dtype=jnp.int32)
    # deterministic class weights (module __init__ takes `weight` of shape (C,))
    weight = jnp.linspace(0.5, 1.5, C, dtype=jnp.float32)

    out = miou_loss(logits, target, weight)
    out = jax.block_until_ready(out)

    ref = _reference_miou_loss(logits, target, weight)
    assert jnp.allclose(out, ref, rtol=1e-5, atol=1e-5), (out, ref)

    print("KERNEL_OK")
</pallas_src>

<mosaic_0001>
module attributes {stable_mosaic.version = 11 : i64} {
  func.func @_miou_kernel(%arg0: i32, %arg1: i32, %arg2: i32, %arg3: memref<1x4x8x128xf32, #tpu.memory_space<vmem>>, %arg4: memref<1x1x8x128xi32, #tpu.memory_space<vmem>>, %arg5: memref<1x1x4x128xf32, #tpu.memory_space<vmem>>, %arg6: memref<1x1x4x128xf32, #tpu.memory_space<vmem>>) attributes {dimension_semantics = [#tpu.dimension_semantics<parallel>, #tpu.dimension_semantics<parallel>, #tpu.dimension_semantics<arbitrary>], iteration_bounds = array<i64: 2, 2, 1>, scalar_prefetch = 0 : i64, scratch_operands = 0 : i64, tpu.core_type = #tpu.core_type<tc>, window_params = [{transform_indices = @transform_0, window_bounds = array<i64: 1, 4, 8, 128>}, {transform_indices = @transform_1, window_bounds = array<i64: 1, 1, 8, 128>}, {transform_indices = @transform_2, window_bounds = array<i64: 1, 1, 4, 128>}, {transform_indices = @transform_3, window_bounds = array<i64: 1, 1, 4, 128>}]} {
    %c0_i32 = arith.constant 0 : i32
    %0 = arith.cmpi eq, %arg2, %c0_i32 : i32
    %1 = arith.extui %0 : i1 to i32
    %c0_i32_0 = arith.constant 0 : i32
    %2 = arith.cmpi ne, %1, %c0_i32_0 : i32
    scf.if %2 {
      %cst_29 = arith.constant 0.000000e+00 : f32
      %44 = vector.broadcast %cst_29 : f32 to vector<1x1x4x128xf32>
      %c0_30 = arith.constant 0 : index
      %c0_31 = arith.constant 0 : index
      %c0_32 = arith.constant 0 : index
      %c0_33 = arith.constant 0 : index
      %45 = vector.load %arg5[%c0_30, %c0_31, %c0_32, %c0_33] : memref<1x1x4x128xf32, #tpu.memory_space<vmem>>, vector<1x1x4x128xf32>
      tpu.vector_store %arg5[%c0_30, %c0_31, %c0_32, %c0_33], %44 {strides = array<i32>} : memref<1x1x4x128xf32, #tpu.memory_space<vmem>>, vector<1x1x4x128xf32>,
      %cst_34 = arith.constant 0.000000e+00 : f32
      %46 = vector.broadcast %cst_34 : f32 to vector<1x1x4x128xf32>
      %c0_35 = arith.constant 0 : index
      %c0_36 = arith.constant 0 : index
      %c0_37 = arith.constant 0 : index
      %c0_38 = arith.constant 0 : index
      %47 = vector.load %arg6[%c0_35, %c0_36, %c0_37, %c0_38] : memref<1x1x4x128xf32, #tpu.memory_space<vmem>>, vector<1x1x4x128xf32>
      tpu.vector_store %arg6[%c0_35, %c0_36, %c0_37, %c0_38], %46 {strides = array<i32>} : memref<1x1x4x128xf32, #tpu.memory_space<vmem>>, vector<1x1x4x128xf32>,
    } else {
    }
    %c0 = arith.constant 0 : index
    %c0_1 = arith.constant 0 : index
    %c0_2 = arith.constant 0 : index
    %c0_3 = arith.constant 0 : index
    %3 = vector.load %arg3[%c0, %c0_1, %c0_2, %c0_3] : memref<1x4x8x128xf32, #tpu.memory_space<vmem>>, vector<1x4x8x128xf32>
    %4 = vector.shape_cast %3 : vector<1x4x8x128xf32> to vector<4x8x128xf32>
    %c0_4 = arith.constant 0 : index
    %c0_5 = arith.constant 0 : index
    %c0_6 = arith.constant 0 : index
    %c0_7 = arith.constant 0 : index
    %5 = vector.load %arg4[%c0_4, %c0_5, %c0_6, %c0_7] : memref<1x1x8x128xi32, #tpu.memory_space<vmem>>, vector<1x1x8x128xi32>
    %6 = vector.shape_cast %5 : vector<1x1x8x128xi32> to vector<1x8x128xi32>
    %cst = arith.constant dense<0xFF800000> : vector<8x128xf32>
    %7 = vector.multi_reduction <maximumf>, %4, %cst [0] : vector<4x8x128xf32> to vector<8x128xf32>
    %8 = vector.shape_cast %7 : vector<8x128xf32> to vector<1x8x128xf32>
    %9 = vector.broadcast %8 : vector<1x8x128xf32> to vector<4x8x128xf32>
    %10 = arith.subf %4, %9 : vector<4x8x128xf32>
    %11 = math.exp %10 : vector<4x8x128xf32>
    %c0_i32_8 = arith.constant 0 : i32
    %12 = vector.broadcast %c0_i32_8 : i32 to vector<1x8x128xi32>
    %13 = arith.cmpi sge, %6, %12 : vector<1x8x128xi32>
    %14 = arith.extui %13 : vector<1x8x128xi1> to vector<1x8x128xi32>
    %15 = arith.sitofp %14 : vector<1x8x128xi32> to vector<1x8x128xf32>
    %cst_9 = arith.constant dense<0.000000e+00> : vector<8x128xf32>
    %16 = vector.multi_reduction <add>, %11, %cst_9 [0] : vector<4x8x128xf32> to vector<8x128xf32>
    %17 = vector.shape_cast %16 : vector<8x128xf32> to vector<1x8x128xf32>
    %18 = arith.divf %15, %17 : vector<1x8x128xf32>
    %19 = vector.broadcast %18 : vector<1x8x128xf32> to vector<4x8x128xf32>
    %20 = arith.mulf %11, %19 : vector<4x8x128xf32>
    %21 = tpu.iota {dimensions = array<i32: 0>} : vector<4x8x128xi32>
    %22 = vector.broadcast %6 : vector<1x8x128xi32> to vector<4x8x128xi32>
    %23 = arith.cmpi eq, %21, %22 : vector<4x8x128xi32>
    %24 = arith.extui %23 : vector<4x8x128xi1> to vector<4x8x128xi32>
    %25 = arith.sitofp %24 : vector<4x8x128xi32> to vector<4x8x128xf32>
    %26 = arith.mulf %20, %25 : vector<4x8x128xf32>
    %cst_10 = arith.constant dense<0.000000e+00> : vector<4x128xf32>
    %27 = vector.multi_reduction <add>, %26, %cst_10 [1] : vector<4x8x128xf32> to vector<4x128xf32>
    %cst_11 = arith.constant dense<0.000000e+00> : vector<4x128xf32>
    %28 = vector.multi_reduction <add>, %20, %cst_11 [1] : vector<4x8x128xf32> to vector<4x128xf32>
    %cst_12 = arith.constant dense<0.000000e+00> : vector<4x128xf32>
    %29 = vector.multi_reduction <add>, %25, %cst_12 [1] : vector<4x8x128xf32> to vector<4x128xf32>
    %30 = arith.addf %28, %29 : vector<4x128xf32>
    %31 = arith.subf %30, %27 : vector<4x128xf32>
    %c0_13 = arith.constant 0 : index
    %c0_14 = arith.constant 0 : index
    %c0_15 = arith.constant 0 : index
    %c0_16 = arith.constant 0 : index
    %32 = vector.load %arg5[%c0_13, %c0_14, %c0_15, %c0_16] : memref<1x1x4x128xf32, #tpu.memory_space<vmem>>, vector<1x1x4x128xf32>
    %33 = vector.shape_cast %32 : vector<1x1x4x128xf32> to vector<4x128xf32>
    %34 = arith.addf %33, %27 : vector<4x128xf32>
    %c0_17 = arith.constant 0 : index
    %c0_18 = arith.constant 0 : index
    %c0_19 = arith.constant 0 : index
    %c0_20 = arith.constant 0 : index
    %35 = vector.load %arg5[%c0_17, %c0_18, %c0_19, %c0_20] : memref<1x1x4x128xf32, #tpu.memory_space<vmem>>, vector<1x1x4x128xf32>
    %36 = vector.shape_cast %35 : vector<1x1x4x128xf32> to vector<4x128xf32>
    %37 = vector.shape_cast %34 : vector<4x128xf32> to vector<1x1x4x128xf32>
    tpu.vector_store %arg5[%c0_17, %c0_18, %c0_19, %c0_20], %37 {strides = array<i32>} : memref<1x1x4x128xf32, #tpu.memory_space<vmem>>, vector<1x1x4x128xf32>,
    %c0_21 = arith.constant 0 : index
    %c0_22 = arith.constant 0 : index
    %c0_23 = arith.constant 0 : index
    %c0_24 = arith.constant 0 : index
    %38 = vector.load %arg6[%c0_21, %c0_22, %c0_23, %c0_24] : memref<1x1x4x128xf32, #tpu.memory_space<vmem>>, vector<1x1x4x128xf32>
    %39 = vector.shape_cast %38 : vector<1x1x4x128xf32> to vector<4x128xf32>
    %40 = arith.addf %39, %31 : vector<4x128xf32>
    %c0_25 = arith.constant 0 : index
    %c0_26 = arith.constant 0 : index
    %c0_27 = arith.constant 0 : index
    %c0_28 = arith.constant 0 : index
    %41 = vector.load %arg6[%c0_25, %c0_26, %c0_27, %c0_28] : memref<1x1x4x128xf32, #tpu.memory_space<vmem>>, vector<1x1x4x128xf32>
    %42 = vector.shape_cast %41 : vector<1x1x4x128xf32> to vector<4x128xf32>
    %43 = vector.shape_cast %40 : vector<4x128xf32> to vector<1x1x4x128xf32>
    tpu.vector_store %arg6[%c0_25, %c0_26, %c0_27, %c0_28], %43 {strides = array<i32>} : memref<1x1x4x128xf32, #tpu.memory_space<vmem>>, vector<1x1x4x128xf32>,
    return
  }
  func.func @transform_0(%arg0: i32, %arg1: i32, %arg2: i32) -> (i32, i32, i32, i32) {
    %c1_i32 = arith.constant 1 : i32
    %0 = arith.muli %arg1, %c1_i32 : i32
    %1 = arith.addi %0, %arg2 : i32
    %c0_i32 = arith.constant 0 : i32
    %c0_i32_0 = arith.constant 0 : i32
    %c0_i32_1 = arith.constant 0 : i32
    return %arg0, %c0_i32, %1, %c0_i32_0 : i32, i32, i32, i32
  }
  func.func @transform_1(%arg0: i32, %arg1: i32, %arg2: i32) -> (i32, i32, i32, i32) {
    %c1_i32 = arith.constant 1 : i32
    %0 = arith.muli %arg1, %c1_i32 : i32
    %1 = arith.addi %0, %arg2 : i32
    %c0_i32 = arith.constant 0 : i32
    %c0_i32_0 = arith.constant 0 : i32
    %c0_i32_1 = arith.constant 0 : i32
    return %arg0, %c0_i32, %1, %c0_i32_0 : i32, i32, i32, i32
  }
  func.func @transform_2(%arg0: i32, %arg1: i32, %arg2: i32) -> (i32, i32, i32, i32) {
    %c0_i32 = arith.constant 0 : i32
    %c0_i32_0 = arith.constant 0 : i32
    %c0_i32_1 = arith.constant 0 : i32
    return %arg0, %arg1, %c0_i32, %c0_i32_0 : i32, i32, i32, i32
  }
  func.func @transform_3(%arg0: i32, %arg1: i32, %arg2: i32) -> (i32, i32, i32, i32) {
    %c0_i32 = arith.constant 0 : i32
    %c0_i32_0 = arith.constant 0 : i32
    %c0_i32_1 = arith.constant 0 : i32
    return %arg0, %arg1, %c0_i32, %c0_i32_0 : i32, i32, i32, i32
  }
}

</mosaic_0001>

<bundles_post_ra>
// kernel: tpu_custom_call.1
= control target key start
LH: loop header
LB: loop body
LE: loop exit
PB: predicated region body
PF: predicated region fallthrough
CT: control target
= control target key end

     0   :  { %s1210_s0 = inlined_call_operand.hbm [shape: f32[2,4,16,128], index: 0, kind: input, shape index: {}]   ;;  %s1211_s1 = inlined_call_operand.hbm [shape: s32[2,1,16,128], index: 1, kind: input, shape index: {}]   ;;  %s1212_s2 = inlined_call_operand.hbm [shape: f32[2,2,4,128], index: 2, kind: output, shape index: {0}]   ;;  %s1213_s3 = inlined_call_operand.hbm [shape: f32[2,2,4,128], index: 3, kind: output, shape index: {1}]  }
   0x1   :  { %1219 = sst [smem:[#allocation20_spill]] %s1210_s0 }
   0x2   :  { %9 = vsyncpa [#allocation3], 0 }
   0x3   :  { %11 = vsyncpa [#allocation3 + $0x1], 0 }
   0x4   :  { %12 = vsyncpa [#allocation6], 0 }
   0x5   :  { %14 = vsyncpa [#allocation6 + $0x1], 0 }
   0x6   :  { %15 = vsyncpa [#allocation4], 0 }
   0x7   :  { %17 = vsyncpa [#allocation4 + $0x1], 0 }
   0x8   :  { %18 = vsyncpa [#allocation9], 0 }
   0x9   :  { %20 = vsyncpa [#allocation9 + $0x1], 0  ;;  %s965_s12 = smov 0   ;;  %s967_s13 = smov 0  }
   0xa   :  { %s969_s14 = smov 0   ;;  %s971_s15 = smov 0  }
   0xb   :  { %s973_s16 = smov 0   ;;  %s975_s17 = smov 0  }
   0xc   :  { %s977_s18 = smov 0   ;;  %s979_s19 = smov 0  }
   0xd LB: > { %1220 = sst [smem:[#allocation14_spill]] %s907_s12  ;;  %s619_s20 = sadd.s32 4294967295, %s935_s19   ;;  %s935_s19 = sphi %s979_s19, %s26_s19   ;;  %s931_s18 = sphi %s977_s18, %s1244_s18   ;;  %s927_s17 = sphi %s975_s17, %s1243_s17   ;;  %s923_s16 = sphi %s973_s16, %s1242_s16   ;;  %s919_s15 = sphi %s971_s15, %s1241_s15   ;;  %s915_s14 = sphi %s969_s14, %s1236_s14   ;;  %s911_s13 = sphi %s967_s13, %s1240_s13   ;;  %s907_s12 = sphi %s965_s12, %s1239_s12  }
   0xe   : > { %1221 = sst [smem:[#allocation15_spill]] %s915_s14  ;;  %s620_s21 = sadd.s32 4294967294, %s935_s19  }
   0xf   : > { %s41_s22 = sadd.s32 1, %s927_s17  ;;  %s45_s23 = sadd.s32 1, %s931_s18 }
  0x10   : > { %p43_p0 = scmp.ge.s32.totalorder %s41_s22, 2  ;;  %s56_s24 = sadd.s32 1, %s915_s14 }
  0x11   : > { %p63_p1 = scmp.ne.s32.totalorder %s915_s14, %s911_s13  ;;  %p64_p2 = scmp.eq.s32.totalorder %s935_s19, 0 }
  0x12   : > { %s1246_s22 = smov (%p43_p0, %s41_s22), 0  ;;  %s1248_s23 = smov (!%p43_p0, %s45_s23), %s931_s18 }
  0x13   : > { %1222 = sst [smem:[#allocation16_spill]] %s1246_s22  ;;  %s52_s25 = ssub.s32 %s927_s17, %s1246_s22 }
  0x14   : > { %p1018_p3 = por %p64_p2, %p63_p1  ;;  %p47_p4 = scmp.ge.s32.totalorder %s1248_s23, 2 }
  0x15   : > { %p69_p5 = scmp.ne.s32.totalorder %s911_s13, %s907_s12  ;;  %p70_p6 = scmp.eq.s32.totalorder %s619_s20, 0 }
  0x16   : > { %p125_p7 = scmp.eq.s32.totalorder %s619_s20, 3  ;;  %s1250_s23 = smov (%p47_p4, %s1248_s23), 0 }
  0x17   : > { %1224 = sst [smem:[#allocation17_spill]] %s1250_s23  ;;  %p1026_p8 = por %p70_p6, %p69_p5 }
  0x18   : > { %p1030_p9 = por %p125_p7, %p63_p1  ;;  %s51_s29 = ssub.s32 %s931_s18, %s1250_s23 }
  0x19   : > { %p131_p10 = scmp.eq.s32.totalorder %s620_s21, 3  ;;  %s53_s30 = sor.u32 %s52_s25, %s51_s29 }
  0x1a   : > { %p54_p11 = scmp.eq.s32.totalorder %s53_s30, 0  ;;  %p669_p13 = scmp.lt.s32.totalorder %s935_s19, 4 }
  0x1b   : > { %p1036_p12 = por %p131_p10, %p69_p5  ;;  %s1042_s5 = sand.u32 1, %s915_s14  }
  0x1c   : > { %s1045_s6 = scalar_select %p54_p11, %s915_s14, %s56_s24  }
  0x1d   : > { %s1227_s4 = scalar_select %p1036_p12, 1, 0 }
  0x1e   : > { %1229 = sst [smem:[#allocation19_spill]] %s1045_s6  ;;  %s623_s7 = sshll.u32 %s1042_s5, 5 }
  0x1f   : > { %1228 = sst [smem:[#allocation18_spill]] %s1227_s4  ;;  %s624_s8 = sshll.u32 %s931_s18, 3 }
  0x20   : > { %s189_s9 = sadd.s32 %s927_s17, %s624_s8  ;;  %s183_s10 = scalar_lea.vmem [#allocation2], %s623_s7 }
  0x21   : > { %s192_s11 = sshll.u32 %s183_s10, 4  ;;  %s625_s20 = sshll.u32 %s189_s9, 7  ;;  %s193_s11 = int_to_ptr.vmem [resolvable:$true] %s192_s11 }
  0x22   : > { %s1230_s0 = sld [smem:[#allocation20_spill]]  ;;  %p1055_p0 = pnand %p669_p13, %p1018_p3 }
  0x23   : > { %s180_s24 = scalar_lea.sflag [#allocation3], %s1042_s5  ;;  %s762_s23 = scalar_lea.vmem %s193_s11, 512 }
  0x24   : > { %p751_p1 = pneg %p1055_p0  ;;  %p763_p2 = scmp.ne.s32.totalorder %s193_s11, %s762_s23 }
  0x25   : > { %s937_s7 = smov [#allocation2]  }
  0x26   : > { %p765_p4 = pnand %p763_p2, %p751_p1  ;;  %s767_s8 = sshll.u32 %s937_s7, 4  ;;  %s768_s8 = int_to_ptr.vmem [resolvable:$false] %s767_s8 }
  0x27   : > { %s769_s9 = scalar_lea.vmem %s768_s8, 1024  ;;  %p770_p6 = scmp.lt.s32.totalorder %s193_s11, %s768_s8 }
  0x28   : > { %s191_s29 = scalar_lea.hbm %s1230_s0, %s625_s20  ;;  %p766_p5 = pneg %p765_p4 }
  0x29   : > { %p771_p3 = scmp.lt.s32.totalorder %s769_s9, %s762_s23 }
  0x2b   : > { %p772_p7 = por %p771_p3, %p770_p6 }
  0x2d   : > { %p773_p10 = pnand %p772_p7, %p766_p5 }
  0x2f   : > { %776 = shalt.err (!%p773_p10)
}
  0x30   : > { %s938_s26 = smov 256   ;;  %s939_s10 = smov 128  }
  0x31   : > { %s940_s20 = smov 8   ;;  %p629_p11 = scmp.ge.s32.totalorder %s935_s19, 1 }
  0x32   : > { %658 = dma.hbm_to_vmem [thread:$0]  (!%p1055_p0), %s191_s29, 512, %s193_s11, %s180_s24, %s938_s26, %s939_s10, %s940_s20  }
  0x33   : > { %p221_p13 = scmp.lt.s32.totalorder %s935_s19, 5  ;;  %s626_s21 = sshll.u32 %s1042_s5, 3 }
  0x34   : > { %s627_s25 = sshll.u32 %s931_s18, 1  ;;  %s206_s7 = scalar_lea.vmem [#allocation5], %s626_s21 }
  0x35   : > { %p1070_p2 = pnand %p629_p11, %p221_p13  ;;  %s216_s8 = sshll.u32 %s206_s7, 4  ;;  %s217_s8 = int_to_ptr.vmem [resolvable:$true] %s216_s8 }
  0x36   : > { %s212_s9 = sadd.s32 %s927_s17, %s627_s25  ;;  %s203_s4 = scalar_lea.sflag [#allocation6], %s1042_s5 }
  0x37   : > { %s628_s0 = sshll.u32 %s212_s9, 7  ;;  %s790_s12 = scalar_lea.vmem %s217_s8, 128 }
  0x38   : > { %s214_s14 = scalar_lea.hbm %s1211_s1, %s628_s0  ;;  %p791_p4 = scmp.ne.s32.totalorder %s217_s8, %s790_s12 }
  0x39   : > { %s941_s11 = smov [#allocation5]  }
  0x3a   : > { %p793_p5 = pnand %p791_p4, %p751_p1  ;;  %s795_s29 = sshll.u32 %s941_s11, 4  ;;  %s796_s29 = int_to_ptr.vmem [resolvable:$false] %s795_s29 }
  0x3b   : > { %s797_s24 = scalar_lea.vmem %s796_s29, 256  ;;  %p798_p3 = scmp.lt.s32.totalorder %s217_s8, %s796_s29 }
  0x3c   : > { %p794_p6 = pneg %p793_p5  ;;  %p799_p7 = scmp.lt.s32.totalorder %s797_s24, %s790_s12 }
  0x3e   : > { %p800_p10 = por %p799_p7, %p798_p3 }
  0x40   : > { %p801_p11 = pnand %p800_p10, %p794_p6 }
  0x42   : > { %804 = shalt.err (!%p801_p11)
}
  0x43   : > { %661 = dma.hbm_to_vmem [thread:$0]  (!%p1055_p0), %s214_s14, 128, %s217_s8, %s203_s4  }
  0x44   : > { %225 = sbr.rel (%p1070_p2) target bundleno = 181 (0xb5), region = 28  ;;  %s1088_s0 = sand.u32 (!%p1070_p2), 1, %s911_s13  }
  0x45   : > { %s630_s22 = sshll.u32 (!%p1070_p2), %s1088_s0, 5  ;;  %s228_s5 = scalar_lea.sflag (!%p1070_p2), [#allocation3], %s1088_s0 }
  0x46   : > { %s231_s6 = scalar_lea.vmem (!%p1070_p2), [#allocation2], %s630_s22 }
  0x49   : > { %890 = dma.done.wait (%p1026_p8), %s228_s5, 512  }
  0x4a   : > { %892 = vsyncadd (%p1026_p8), %s228_s5, 4294966784  ;;  %s631_s12 = sshll.u32 %s1088_s0, 3  ;;  %s237_s14 = scalar_lea.sflag [#allocation6], %s1088_s0 }
  0x4b   : > { %s240_s4 = scalar_lea.vmem [#allocation5], %s631_s12 }
  0x4c   : > { %894 = dma.done.wait (%p1026_p8), %s237_s14, 128  }
  0x4d   : > { %896 = vsyncadd (%p1026_p8), %s237_s14, 4294967168  ;;  %s632_s30 = sshll.u32 %s1088_s0, 2  ;;  %v942_v0 = vmov 0.0   ;;  %v281_v1 = vld [vmem:[%s231_s6] sm:$0xff]  ;;  %v282_v2 = vld [vmem:[%s231_s6 + $0x8] sm:$0xff]  ;;  %vm414_vm5 = vcmask 1041409  }
  0x4e   : > { %s1103_s26 = scalar_lea.vmem [#allocation7], %s632_s30  ;;  %s1106_s10 = scalar_lea.vmem [#allocation8], %s632_s30  ;;  %v283_v3 = vld [vmem:[%s231_s6 + $0x10] sm:$0xff]  ;;  %v284_v4 = vld [vmem:[%s231_s6 + $0x18] sm:$0xff]  ;;  %v286_v5 = vmax.f32 %v281_v1, %v282_v2  ;;  %v285_v16 = vld [vmem:[%s240_s4] sm:$0xff]  ;;  %vm416_vm6 = vcmask 1042434  }
  0x4f   : > { %279 = vst [vmem:[%s1103_s26] sm:$0xf] %v942_v0  ;;  %280 = vst [vmem:[%s1106_s10] sm:$0xf] %v942_v0  ;;  %v287_v6 = vmax.f32 %v283_v3, %v284_v4  ;;  %vm313_vm0 = vcmp.eq.s32.totalorder %v285_v16, 0  ;;  %vm314_vm1 = vcmp.eq.s32.totalorder %v285_v16, 1  ;;  %vm315_vm2 = vcmp.eq.s32.totalorder %v285_v16, 2  ;;  %s641_s27 = sshll.u32 %s923_s16, 1 }
  0x50   : > { %vm316_vm3 = vcmp.eq.s32.totalorder %v285_v16, 3  ;;  %v635_v19 = vsel %vm313_vm0, 1.0, %v942_v0  ;;  %v636_v22 = vsel %vm314_vm1, 1.0, %v942_v0  ;;  %v637_v23 = vsel %vm315_vm2, 1.0, %v942_v0  ;;  %s1111_s20 = sadd.s32 %s919_s15, %s641_s27  ;;  %s455_s21 = sshll.u32 %s1103_s26, 4  ;;  %s1127_s21 = int_to_ptr.vmem [resolvable:$true] %s455_s21 }
  0x51   : > { %v288_v7 = vmax.f32 %v286_v5, %v287_v6  ;;  %v638_v24 = vsel %vm316_vm3, 1.0, %v942_v0  ;;  %v377_v27 = vrot.slane %v635_v19, 4  ;;  %v383_v28 = vrot.slane %v636_v22, 4  ;;  %s642_s16 = sshll.u32 %s1111_s20, 6  ;;  %s470_s15 = sshll.u32 %s1106_s10, 4  ;;  %s1137_s15 = int_to_ptr.vmem [resolvable:$true] %s470_s15 }
  0x52   : > { %v389_v29 = vrot.slane %v637_v23, 4  ;;  %v395_v30 = vrot.slane %v638_v24, 4  ;;  %vm301_vm4 = vcmp.ge.s32.totalorder %v285_v16, 0  ;;  %vm418_vm7 = vcmask 1043459   ;;  %s1125_s7 = scalar_lea.hbm %s1212_s2, %s642_s16  ;;  %s1135_s11 = scalar_lea.hbm %s1213_s3, %s642_s16 }
  0x53   : > { %v289_v8 = vsub.f32 %v281_v1, %v288_v7  ;;  %v290_v9 = vsub.f32 %v282_v2, %v288_v7  ;;  %v291_v10 = vsub.f32 %v283_v3, %v288_v7  ;;  %v292_v11 = vsub.f32 %v284_v4, %v288_v7  ;;  %s435_s29 = scalar_lea.sflag [#allocation4], %s1088_s0  ;;  %s805_s24 = scalar_lea.vmem %s1127_s21, 64 }
  0x54   : > { %v378_v32 = vadd.f32 %v635_v19, %v377_v27  ;;  %v384_v33 = vadd.f32 %v636_v22, %v383_v28  ;;  %v390_v34 = vadd.f32 %v637_v23, %v389_v29  ;;  %v396_v35 = vadd.f32 %v638_v24, %v395_v30  ;;  %p806_p8 = scmp.ne.s32.totalorder %s1127_s21, %s805_s24  ;;  %s943_s22 = smov [#allocation7]  }
  0x55   : > { %v293_v12 = vmul.f32 1.442695, %v289_v8  ;;  %v295_v13 = vmul.f32 1.442695, %v290_v9  ;;  %v297_v14 = vmul.f32 1.442695, %v291_v10 }
  0x56   : > { %v299_v15 = vmul.f32 1.442695, %v292_v11  ;;  %v379_v36 = vrot.slane %v378_v32, 2  ;;  %v385_v37 = vrot.slane %v384_v33, 2  ;;  %v391_v38 = vrot.slane %v390_v34, 2  ;;  %p807_p0 = pnand %p806_p8, %p1030_p9  ;;  %s809_s5 = sshll.u32 %s943_s22, 4  ;;  %s810_s5 = int_to_ptr.vmem [resolvable:$false] %s809_s5 }
  0x57   : > { %739 = vpow2.f32 %v293_v12  ;;  %v397_v39 = vrot.slane %v396_v35, 2  ;;  %v634_v44 = vsel %vm301_vm4, 1.0, %v942_v0  ;;  %s811_s6 = scalar_lea.vmem %s810_s5, 128  ;;  %p812_p13 = scmp.lt.s32.totalorder %s1127_s21, %s810_s5 }
  0x58   : > { %741 = vpow2.f32 %v295_v13  ;;  %v380_v40 = vadd.f32 %v379_v36, %v378_v32  ;;  %v386_v41 = vadd.f32 %v385_v37, %v384_v33  ;;  %v392_v42 = vadd.f32 %v391_v38, %v390_v34  ;;  %p808_p1 = pneg %p807_p0  ;;  %p813_p2 = scmp.lt.s32.totalorder %s811_s6, %s805_s24 }
  0x59   : > { %743 = vpow2.f32 %v297_v14  ;;  %v398_v43 = vadd.f32 %v397_v39, %v396_v35 }
  0x5a   : > { %745 = vpow2.f32 %v299_v15  ;;  %v381_v46 = vrot.slane %v380_v40, 1  ;;  %v387_v47 = vrot.slane %v386_v41, 1  ;;  %v393_v48 = vrot.slane %v392_v42, 1  ;;  %p814_p4 = por %p813_p2, %p812_p13 }
  0x5b   : > { %v399_v49 = vrot.slane %v398_v43, 1 }
  0x5c   : > { %v382_v55 = vadd.f32 %v381_v46, %v380_v40  ;;  %v388_v56 = vadd.f32 %v387_v47, %v386_v41  ;;  %v394_v57 = vadd.f32 %v393_v48, %v392_v42  ;;  %p815_p5 = pnand %p814_p4, %p808_p1 }
  0x5d   : > { %v400_v58 = vadd.f32 %v399_v49, %v398_v43 }
  0x64   : > { %v740_v17 = vpop.eup %739 }
  0x65   : > { %v742_v18 = vpop.eup %741 }
  0x66   : > { %v744_v20 = vpop.eup %743  ;;  %v304_v21 = vadd.f32 %v742_v18, %v740_v17 }
  0x67   : > { %v746_v25 = vpop.eup %745 }
  0x68   : > { %v305_v26 = vadd.f32 %v744_v20, %v304_v21 }
  0x6a   : > { %v306_v31 = vadd.f32 %v746_v25, %v305_v26 }
  0x6c   : > { %747 = vrcp.f32 %v306_v31 }
  0x79   : > { %v748_v45 = vpop.eup %747 }
  0x7a   : > { %v308_v50 = vmul.f32 %v748_v45, %v634_v44 }
  0x7c   : > { %v309_v51 = vmul.f32 %v740_v17, %v308_v50  ;;  %v310_v52 = vmul.f32 %v742_v18, %v308_v50  ;;  %v311_v53 = vmul.f32 %v744_v20, %v308_v50  ;;  %v312_v54 = vmul.f32 %v746_v25, %v308_v50 }
  0x7e   : > { %v325_v59 = vmul.f32 %v635_v19, %v309_v51  ;;  %v326_v60 = vmul.f32 %v636_v22, %v310_v52  ;;  %v327_v61 = vmul.f32 %v637_v23, %v311_v53  ;;  %v328_v62 = vmul.f32 %v638_v24, %v312_v54 }
  0x7f   : > { %v353_v63 = vrot.slane %v309_v51, 4  ;;  %v359_v0 = vrot.slane %v310_v52, 4  ;;  %v365_v1 = vrot.slane %v311_v53, 4  ;;  %v371_v2 = vrot.slane %v312_v54, 4 }
  0x80   : > { %v329_v3 = vrot.slane %v325_v59, 4  ;;  %v335_v4 = vrot.slane %v326_v60, 4  ;;  %v341_v5 = vrot.slane %v327_v61, 4  ;;  %v347_v6 = vrot.slane %v328_v62, 4 }
  0x81   : > { %v354_v7 = vadd.f32 %v353_v63, %v309_v51  ;;  %v360_v8 = vadd.f32 %v359_v0, %v310_v52  ;;  %v366_v9 = vadd.f32 %v365_v1, %v311_v53  ;;  %v372_v10 = vadd.f32 %v371_v2, %v312_v54  ;;  %v409_v51 = vld [vmem:[%s1103_s26] sm:$0xf] }
  0x82   : > { %v330_v11 = vadd.f32 %v329_v3, %v325_v59  ;;  %v336_v12 = vadd.f32 %v335_v4, %v326_v60  ;;  %v342_v13 = vadd.f32 %v341_v5, %v327_v61  ;;  %v348_v14 = vadd.f32 %v347_v6, %v328_v62 }
  0x83   : > { %v355_v15 = vrot.slane %v354_v7, 2  ;;  %v361_v16 = vrot.slane %v360_v8, 2  ;;  %v367_v17 = vrot.slane %v366_v9, 2  ;;  %v373_v18 = vrot.slane %v372_v10, 2 }
  0x84   : > { %v331_v19 = vrot.slane %v330_v11, 2  ;;  %v337_v20 = vrot.slane %v336_v12, 2  ;;  %v343_v21 = vrot.slane %v342_v13, 2  ;;  %v349_v22 = vrot.slane %v348_v14, 2 }
  0x85   : > { %v356_v23 = vadd.f32 %v355_v15, %v354_v7  ;;  %v362_v24 = vadd.f32 %v361_v16, %v360_v8  ;;  %v368_v25 = vadd.f32 %v367_v17, %v366_v9  ;;  %v374_v26 = vadd.f32 %v373_v18, %v372_v10 }
  0x86   : > { %v332_v27 = vadd.f32 %v331_v19, %v330_v11  ;;  %v338_v28 = vadd.f32 %v337_v20, %v336_v12  ;;  %v344_v29 = vadd.f32 %v343_v21, %v342_v13  ;;  %v350_v30 = vadd.f32 %v349_v22, %v348_v14 }
  0x87   : > { %v357_v31 = vrot.slane %v356_v23, 1  ;;  %v363_v32 = vrot.slane %v362_v24, 1  ;;  %v369_v33 = vrot.slane %v368_v25, 1  ;;  %v375_v34 = vrot.slane %v374_v26, 1 }
  0x88   : > { %v333_v35 = vrot.slane %v332_v27, 1  ;;  %v339_v36 = vrot.slane %v338_v28, 1  ;;  %v345_v37 = vrot.slane %v344_v29, 1  ;;  %v351_v38 = vrot.slane %v350_v30, 1 }
  0x89   : > { %v358_v39 = vadd.f32 %v357_v31, %v356_v23  ;;  %v364_v40 = vadd.f32 %v363_v32, %v362_v24  ;;  %v370_v41 = vadd.f32 %v369_v33, %v368_v25  ;;  %v376_v42 = vadd.f32 %v375_v34, %v374_v26 }
  0x8a   : > { %v334_v43 = vadd.f32 %v333_v35, %v332_v27  ;;  %v340_v44 = vadd.f32 %v339_v36, %v338_v28  ;;  %v346_v45 = vadd.f32 %v345_v37, %v344_v29  ;;  %v352_v46 = vadd.f32 %v351_v38, %v350_v30 }
  0x8b   : > { %v401_v47 = vadd.f32 %v382_v55, %v358_v39  ;;  %v402_v48 = vadd.f32 %v388_v56, %v364_v40  ;;  %v403_v49 = vadd.f32 %v394_v57, %v370_v41  ;;  %v404_v50 = vadd.f32 %v400_v58, %v376_v42  ;;  %v423_v56 = vld [vmem:[%s1106_s10] sm:$0xf] }
  0x8c   : > { %v415_v52 = vsel %vm414_vm5, %v340_v44, %v334_v43 }
  0x8d   : > { %v417_v53 = vsel %vm416_vm6, %v346_v45, %v415_v52  ;;  %v405_v54 = vsub.f32 %v401_v47, %v334_v43  ;;  %v406_v59 = vsub.f32 %v402_v48, %v340_v44  ;;  %v407_v60 = vsub.f32 %v403_v49, %v346_v45 }
  0x8e   : > { %v419_v61 = vsel %vm418_vm7, %v352_v46, %v417_v53  ;;  %v408_v62 = vsub.f32 %v404_v50, %v352_v46 }
  0x8f   : > { %v421_v55 = vadd.f32 %v419_v61, %v409_v51  ;;  %v428_v57 = vsel %vm414_vm5, %v406_v59, %v405_v54 }
  0x90   : > { %v429_v58 = vsel %vm416_vm6, %v407_v60, %v428_v57 }
  0x91   : > { %422 = vst [vmem:[%s1103_s26] sm:$0xf] %v421_v55  ;;  %v430_v63 = vsel %vm418_vm7, %v408_v62, %v429_v58 }
  0x92   : > { %v432_v0 = vadd.f32 %v430_v63, %v423_v56 }
  0x93   : > { %818 = shalt.err (!%p815_p5)
}
  0x94   : > { %s819_s12 = scalar_lea.hbm %s1125_s7, 64  ;;  %s823_s30 = scalar_lea.hbm %s1212_s2, 256 }
  0x95   : > { %p820_p6 = scmp.ne.s32.totalorder %s1125_s7, %s819_s12  ;;  %p824_p10 = scmp.lt.s32.totalorder %s1125_s7, %s1212_s2 }
  0x96   : > { %p825_p11 = scmp.lt.s32.totalorder %s823_s30, %s819_s12 }
  0x97   : > { %p821_p3 = pnand %p820_p6, %p1030_p9 }
  0x98   : > { %p826_p8 = por %p825_p11, %p824_p10 }
  0x99   : > { %p822_p7 = pneg %p821_p3 }
  0x9b   : > { %p827_p0 = pnand %p826_p8, %p822_p7 }
  0x9d   : > { %830 = shalt.err (!%p827_p0)
}
  0x9e   : > { %651 = dma.vmem_to_hbm [thread:$0]  (%p1030_p9), %s1127_s21, 64, %s1125_s7, %s435_s29   ;;  %433 = vst [vmem:[%s1106_s10] sm:$0xf] %v432_v0 }
  0x9f   : > { %s440_s20 = scalar_lea.sflag [#allocation9], %s1088_s0  ;;  %s831_s16 = scalar_lea.vmem %s1137_s15, 64 }
  0xa0   : > { %p832_p1 = scmp.ne.s32.totalorder %s1137_s15, %s831_s16  ;;  %s944_s23 = smov [#allocation8]  }
  0xa1   : > { %s835_s25 = sshll.u32 %s944_s23, 4  ;;  %s836_s25 = int_to_ptr.vmem [resolvable:$false] %s835_s25 }
  0xa2   : > { %p833_p13 = pnand %p832_p1, %p1030_p9  ;;  %s837_s8 = scalar_lea.vmem %s836_s25, 128 }
  0xa3   : > { %p838_p4 = scmp.lt.s32.totalorder %s1137_s15, %s836_s25  ;;  %p839_p5 = scmp.lt.s32.totalorder %s837_s8, %s831_s16 }
  0xa4   : > { %p834_p2 = pneg %p833_p13 }
  0xa5   : > { %p840_p6 = por %p839_p5, %p838_p4 }
  0xa7   : > { %p841_p3 = pnand %p840_p6, %p834_p2 }
  0xa9   : > { %844 = shalt.err (!%p841_p3)
}
  0xaa   : > { %s845_s10 = scalar_lea.hbm %s1135_s11, 64  ;;  %s849_s7 = scalar_lea.hbm %s1213_s3, 256 }
  0xab   : > { %p846_p7 = scmp.ne.s32.totalorder %s1135_s11, %s845_s10  ;;  %p850_p8 = scmp.lt.s32.totalorder %s1135_s11, %s1213_s3 }
  0xac   : > { %p851_p0 = scmp.lt.s32.totalorder %s849_s7, %s845_s10 }
  0xad   : > { %p847_p10 = pnand %p846_p7, %p1030_p9 }
  0xae   : > { %p852_p1 = por %p851_p0, %p850_p8 }
  0xaf   : > { %p848_p11 = pneg %p847_p10 }
  0xb1   : > { %p853_p13 = pnand %p852_p1, %p848_p11 }
  0xb3   : > { %856 = shalt.err (!%p853_p13)
}
  0xb4   : > { %652 = dma.vmem_to_hbm [thread:$0]  (%p1030_p9), %s1137_s15, 64, %s1135_s11, %s440_s20  }
  0xb5 PF: > { %s1233_s24 = sld [smem:[#allocation14_spill]]  ;;  %p670_p2 = scmp.ge.s32.totalorder %s935_s19, 2 }
  0xb7   : > { %p663_p4 = pnand %p670_p2, %p1036_p12 }
  0xb9   : > { %p664_p5 = pneg %p663_p4 }
  0xbb   : > { %s482_s5 = sand.u32 1, %s1233_s24  }
  0xbc   : > { %s483_s6 = scalar_lea.sflag [#allocation4], %s482_s5 }
  0xbd   : > { %898 = dma.done.wait (%p664_p5), %s483_s6, 64  }
  0xbe   : > { %900 = vsyncadd (%p664_p5), %s483_s6, 4294967232  ;;  %s492_s12 = scalar_lea.sflag [#allocation9], %s482_s5 }
  0xbf   : > { %902 = dma.done.wait (%p664_p5), %s492_s12, 64  }
  0xc0   : > { %904 = vsyncadd (%p664_p5), %s492_s12, 4294967232  ;;  %s26_s19 = sadd.s32 1, %s935_s19   ;;  %s1235_s28 = sld [smem:[#allocation15_spill]] }
  0xc1   : > { %p23_p6 = scmp.ge.s32.totalorder %s26_s19, 6   ;;  %s1236_s14 = sld [smem:[#allocation19_spill]] }
  0xc2   : > { %s1237_s11 = sld [smem:[#allocation16_spill]]  ;;  %s1239_s12 = smov %s911_s13 }
  0xc3   : > { %s1238_s4 = sld [smem:[#allocation17_spill]]  ;;  %s1241_s15 = smov %s927_s17 }
  0xc4   : > { %s1242_s16 = smov %s931_s18 }
  0xc5   :  { %25 = sbr.rel (!%p23_p6) target bundleno = 13 (0xd), region = 107 }
  0xc6   : > { %s1240_s13 = smov %s1235_s28 }
  0xc8   : > { %s1243_s17 = smov %s1237_s11 }
  0xc9   : > { %s1244_s18 = smov %s1238_s4 }
  0xca   :  { %497 = vsyncpa [#allocation3], 1 }
  0xcb   :  { %499 = vsyncpa [#allocation3 + $0x1], 1 }
  0xcc   :  { %500 = vsyncpa [#allocation6], 1 }
  0xcd   :  { %502 = vsyncpa [#allocation6 + $0x1], 1 }
  0xce   :  { %503 = vsyncpa [#allocation4], 1 }
  0xcf   :  { %505 = vsyncpa [#allocation4 + $0x1], 1 }
  0xd0   :  { %506 = vsyncpa [#allocation9], 1 }
  0xd1   :  { %508 = vsyncpa [#allocation9 + $0x1], 1 }

</bundles_post_ra>
